<compile_context>
chip_gen: v7x
topology: tpu7x:2x2x1
jax: 0.10.0
libtpu: 0.0.40
codegen_flags: <defaults>
</compile_context>

<pallas_src>
import functools

import jax
import jax.numpy as jnp
from jax.experimental import pallas as pl
from jax.experimental.pallas import tpu as pltpu

WIN_SIZE = 11
WIN_SIGMA = 1.5
DATA_RANGE = 1.0
K1, K2 = 0.01, 0.03
C1 = (K1 * DATA_RANGE) ** 2
C2 = (K2 * DATA_RANGE) ** 2


def _gaussian_window(win_size, sigma):
    coords = jnp.arange(win_size, dtype=jnp.float32) - (win_size - 1) / 2.0
    g = jnp.exp(-(coords ** 2) / (2.0 * sigma ** 2))
    return g / jnp.sum(g)


def _filter_matrix(length, win_size, sigma):
    """(length, length-win+1) matrix M so that A @ M is valid 1-D Gaussian filtering."""
    g = _gaussian_window(win_size, sigma)
    out_len = length - win_size + 1
    rows = jnp.arange(length)[:, None]
    cols = jnp.arange(out_len)[None, :]
    k = rows - cols
    valid = (k >= 0) & (k < win_size)
    taps = jnp.take(g, jnp.clip(k, 0, win_size - 1))
    return jnp.where(valid, taps, 0.0).astype(jnp.float32)


def _loss_kernel(gwb_ref, ght_ref, p_ref, t_ref, mse_ref, ssim_ref, *, ho):
    """One grid step: B planes lane-stacked as (H, B*W); emits two scalar partials."""
    x = p_ref[...].astype(jnp.float32)   # (H, B*W)
    y = t_ref[...].astype(jnp.float32)

    # ---- MSE partial: full in-kernel reduction to a single f32 --------------
    diff = x - y
    dd = diff * diff
    mse_ref[...] = jnp.sum(jnp.sum(dd, axis=1, keepdims=True), axis=0, keepdims=True)

    # ---- SSIM: per-component Gaussian filtering (valid conv) via 2 matrices -
    gwb = gwb_ref[...]                   # (B*W, B*Wo)  column filter (block-diag)
    ght = ght_ref[...]                   # (Ho_pad, H)  row filter (padded rows are 0)

    # Column filter (contract W within each plane) — five dots sharing the RHS,
    # no 5-way concat staging through the vector-store slot.
    cx = jnp.dot(x, gwb, preferred_element_type=jnp.float32)        # (H, B*Wo)
    cy = jnp.dot(y, gwb, preferred_element_type=jnp.float32)
    cxx = jnp.dot(x * x, gwb, preferred_element_type=jnp.float32)
    cyy = jnp.dot(y * y, gwb, preferred_element_type=jnp.float32)
    cxy = jnp.dot(x * y, gwb, preferred_element_type=jnp.float32)

    # Row filter (contract H) — five dots sharing the LHS.
    mu_x = jnp.dot(ght, cx, preferred_element_type=jnp.float32)     # (Ho_pad, B*Wo)
    mu_y = jnp.dot(ght, cy, preferred_element_type=jnp.float32)
    ex2 = jnp.dot(ght, cxx, preferred_element_type=jnp.float32)
    ey2 = jnp.dot(ght, cyy, preferred_element_type=jnp.float32)
    exy = jnp.dot(ght, cxy, preferred_element_type=jnp.float32)

    sigma_xx = ex2 - mu_x * mu_x
    sigma_yy = ey2 - mu_y * mu_y
    sigma_xy = exy - mu_x * mu_y

    num = (2.0 * mu_x * mu_y + C1) * (2.0 * sigma_xy + C2)
    den = (mu_x * mu_x + mu_y * mu_y + C1) * (sigma_xx + sigma_yy + C2)
    ssim_map = num / den                 # exact division (tolerance parity w/ torch)

    # Rows coming from the Ho -> Ho_pad padding evaluate to ~1 (zero filter rows);
    # mask them out before reducing.
    row = jax.lax.broadcasted_iota(jnp.int32, ssim_map.shape, 0)
    ssim_map = jnp.where(row < ho, ssim_map, 0.0)

    ssim_ref[...] = jnp.sum(jnp.sum(ssim_map, axis=1, keepdims=True),
                            axis=0, keepdims=True)


def _choose_block_planes(n_planes, w):
    """Smallest plane block B that gives a lane-dense (B*W % 128 == 0) block.

    For W >= 128 we keep the native per-plane layout (B = 1, no transpose, no
    kron).  If no divisor of n_planes is lane-dense (awkward W), fall back to
    the smallest divisor with B*W >= 128 (block covers the full last dim of the
    re-laid-out array, so it stays legal; only input loads are slightly masked).
    """
    if w >= 128:
        return 1
    dense = None
    at_least_128 = None
    for b in range(1, n_planes + 1):
        if n_planes % b:
            continue
        if at_least_128 is None and b * w >= 128:
            at_least_128 = b
        if (b * w) % 128 == 0 and b * w <= 512:
            dense = b
            break                        # smallest lane-dense divisor
    if dense is not None:
        return dense
    if at_least_128 is not None:
        return at_least_128
    return n_planes


def _vmem_estimate_bytes(h, bw, bwo, ho_pad, itemsize):
    inputs = 2 * 2 * h * bw * itemsize                     # pred+target, double-buffered
    consts = 2 * (bw * bwo + ho_pad * h) * 4               # filter constants, double-buffered
    interm = (5 * h * bw + 5 * h * bwo + 5 * ho_pad * bwo) * 4
    return inputs + consts + interm


def mse_msssim_combined_mag_loss(pred, target, weight=0.5):
    """Returns (combined_loss, mse_loss, ssim_loss) matching the PyTorch module."""
    assert 0.0 <= weight <= 1.0
    n, c, h, w = pred.shape
    p = n * c
    ho, wo = h - WIN_SIZE + 1, w - WIN_SIZE + 1
    assert ho > 0 and wo > 0, "spatial dims must exceed the SSIM window"
    ho_pad = ((ho + 7) // 8) * 8

    b = _choose_block_planes(p, w)
    nblk = p // b
    bw, bwo = b * w, b * wo

    # Layout: (nblk, H, B*W).  B == 1 needs no transpose at all (pure reshape).
    if b == 1:
        pred3 = pred.reshape(p, h, w)
        targ3 = target.reshape(p, h, w)
    else:
        pred3 = pred.reshape(nblk, b, h, w).transpose(0, 2, 1, 3).reshape(nblk, h, bw)
        targ3 = target.reshape(nblk, b, h, w).transpose(0, 2, 1, 3).reshape(nblk, h, bw)

    # Filter constants (built once at trace time, f32).
    gw = _filter_matrix(w, WIN_SIZE, WIN_SIGMA)                     # (W, Wo)
    if b == 1:
        gwb = gw
    else:
        gwb = jnp.kron(jnp.eye(b, dtype=jnp.float32), gw)           # (B*W, B*Wo)
    ght = _filter_matrix(h, WIN_SIZE, WIN_SIGMA).T                  # (Ho, H) pre-transposed
    ght_pad = jnp.zeros((ho_pad, h), jnp.float32).at[:ho, :].set(ght)

    kernel = functools.partial(_loss_kernel, ho=ho)

    itemsize = jnp.dtype(pred.dtype).itemsize
    est = _vmem_estimate_bytes(h, bw, bwo, ho_pad, itemsize)
    cparams = {"dimension_semantics": ("parallel",)}
    if est > (30 << 20):
        # TODO(synk): for very large H also tile the H axis instead of just
        # raising the scoped-VMEM limit.
        cparams["vmem_limit_bytes"] = int(min(est + (4 << 20), 64 << 20))
    compiler_params = pltpu.CompilerParams(**cparams)

    mse_part, ssim_part = pl.pallas_call(
        kernel,
        out_shape=(jax.ShapeDtypeStruct((nblk, 1), jnp.float32),
                   jax.ShapeDtypeStruct((nblk, 1), jnp.float32)),
        grid_spec=pltpu.PrefetchScalarGridSpec(
            num_scalar_prefetch=0,
            grid=(nblk,),
            in_specs=[
                pl.BlockSpec((bw, bwo), lambda i: (0, 0)),           # column filter
                pl.BlockSpec((ho_pad, h), lambda i: (0, 0)),         # row filter
                pl.BlockSpec((None, h, bw), lambda i: (i, 0, 0)),    # pred planes
                pl.BlockSpec((None, h, bw), lambda i: (i, 0, 0)),    # target planes
            ],
            out_specs=[
                pl.BlockSpec((1, 1), lambda i: (i, 0)),              # per-block MSE sum
                pl.BlockSpec((1, 1), lambda i: (i, 0)),              # per-block SSIM sum
            ],
        ),
        compiler_params=compiler_params,
    )(gwb, ght_pad, pred3, targ3)

    mse_loss = jnp.sum(mse_part) / (p * h * w)
    ssim_val = jnp.sum(ssim_part) / (p * ho * wo)
    ssim_loss = -ssim_val
    combined = weight * mse_loss + (1.0 - weight) * ssim_loss
    return combined, mse_loss, ssim_loss


if __name__ == "__main__":
    key = jax.random.PRNGKey(0)
    k1, k2 = jax.random.split(key)
    N, Cc, H, W = 2, 4, 16, 16
    pred = jax.random.uniform(k1, (N, Cc, H, W), dtype=jnp.float32)
    target = jnp.clip(pred + 0.05 * jax.random.normal(k2, (N, Cc, H, W)), 0.0, 1.0)

    combined, mse_loss, ssim_loss = mse_msssim_combined_mag_loss(pred, target, weight=0.5)
    jax.block_until_ready((combined, mse_loss, ssim_loss))
    print("KERNEL_OK")
</pallas_src>

<mosaic_0001>
module attributes {stable_mosaic.version = 11 : i64} {
  func.func @_loss_kernel(%arg0: i32, %arg1: memref<128x48xf32, #tpu.memory_space<vmem>>, %arg2: memref<8x16xf32, #tpu.memory_space<vmem>>, %arg3: memref<1x16x128xf32, #tpu.memory_space<vmem>>, %arg4: memref<1x16x128xf32, #tpu.memory_space<vmem>>, %arg5: memref<1x1xf32, #tpu.memory_space<vmem>>, %arg6: memref<1x1xf32, #tpu.memory_space<vmem>>) attributes {dimension_semantics = [#tpu.dimension_semantics<parallel>], iteration_bounds = array<i64: 1>, scalar_prefetch = 0 : i64, scratch_operands = 0 : i64, tpu.core_type = #tpu.core_type<tc>, window_params = [{pipeline_mode = #tpu.pipeline_mode<synchronous>, transform_indices = @transform_0, window_bounds = array<i64: 128, 48>}, {pipeline_mode = #tpu.pipeline_mode<synchronous>, transform_indices = @transform_1, window_bounds = array<i64: 8, 16>}, {transform_indices = @transform_2, window_bounds = array<i64: 1, 16, 128>}, {transform_indices = @transform_3, window_bounds = array<i64: 1, 16, 128>}, {transform_indices = @transform_4, window_bounds = array<i64: 1, 1>}, {transform_indices = @transform_5, window_bounds = array<i64: 1, 1>}]} {
    %c0 = arith.constant 0 : index
    %c0_0 = arith.constant 0 : index
    %c0_1 = arith.constant 0 : index
    %0 = vector.load %arg3[%c0, %c0_0, %c0_1] : memref<1x16x128xf32, #tpu.memory_space<vmem>>, vector<1x16x128xf32>
    %1 = vector.shape_cast %0 : vector<1x16x128xf32> to vector<16x128xf32>
    %c0_2 = arith.constant 0 : index
    %c0_3 = arith.constant 0 : index
    %c0_4 = arith.constant 0 : index
    %2 = vector.load %arg4[%c0_2, %c0_3, %c0_4] : memref<1x16x128xf32, #tpu.memory_space<vmem>>, vector<1x16x128xf32>
    %3 = vector.shape_cast %2 : vector<1x16x128xf32> to vector<16x128xf32>
    %4 = arith.subf %1, %3 : vector<16x128xf32>
    %5 = arith.mulf %4, %4 : vector<16x128xf32>
    %cst = arith.constant dense<0.000000e+00> : vector<16xf32>
    %6 = vector.multi_reduction <add>, %5, %cst [1] : vector<16x128xf32> to vector<16xf32>
    %7 = vector.shape_cast %6 : vector<16xf32> to vector<16x1xf32>
    %cst_5 = arith.constant dense<0.000000e+00> : vector<1xf32>
    %8 = vector.multi_reduction <add>, %7, %cst_5 [0] : vector<16x1xf32> to vector<1xf32>
    %9 = vector.shape_cast %8 : vector<1xf32> to vector<1x1xf32>
    %c0_6 = arith.constant 0 : index
    %c0_7 = arith.constant 0 : index
    %10 = vector.load %arg5[%c0_6, %c0_7] : memref<1x1xf32, #tpu.memory_space<vmem>>, vector<1x1xf32>
    tpu.vector_store %arg5[%c0_6, %c0_7], %9 {strides = array<i32>} : memref<1x1xf32, #tpu.memory_space<vmem>>, vector<1x1xf32>,
    %c0_8 = arith.constant 0 : index
    %c0_9 = arith.constant 0 : index
    %11 = vector.load %arg1[%c0_8, %c0_9] : memref<128x48xf32, #tpu.memory_space<vmem>>, vector<128x48xf32>
    %c0_10 = arith.constant 0 : index
    %c0_11 = arith.constant 0 : index
    %12 = vector.load %arg2[%c0_10, %c0_11] : memref<8x16xf32, #tpu.memory_space<vmem>>, vector<8x16xf32>
    %cst_12 = arith.constant dense<0.000000e+00> : vector<16x48xf32>
    %13 = tpu.matmul %1, %11, %cst_12 {dimension_numbers = #tpu.dot_dimension_numbers<[1], [0], [0], [1], [0, 0, 1, 1], [], []>} : vector<16x128xf32>, vector<128x48xf32>, vector<16x48xf32> -> vector<16x48xf32>
    %cst_13 = arith.constant dense<0.000000e+00> : vector<16x48xf32>
    %14 = tpu.matmul %3, %11, %cst_13 {dimension_numbers = #tpu.dot_dimension_numbers<[1], [0], [0], [1], [0, 0, 1, 1], [], []>} : vector<16x128xf32>, vector<128x48xf32>, vector<16x48xf32> -> vector<16x48xf32>
    %15 = arith.mulf %1, %1 : vector<16x128xf32>
    %cst_14 = arith.constant dense<0.000000e+00> : vector<16x48xf32>
    %16 = tpu.matmul %15, %11, %cst_14 {dimension_numbers = #tpu.dot_dimension_numbers<[1], [0], [0], [1], [0, 0, 1, 1], [], []>} : vector<16x128xf32>, vector<128x48xf32>, vector<16x48xf32> -> vector<16x48xf32>
    %17 = arith.mulf %3, %3 : vector<16x128xf32>
    %cst_15 = arith.constant dense<0.000000e+00> : vector<16x48xf32>
    %18 = tpu.matmul %17, %11, %cst_15 {dimension_numbers = #tpu.dot_dimension_numbers<[1], [0], [0], [1], [0, 0, 1, 1], [], []>} : vector<16x128xf32>, vector<128x48xf32>, vector<16x48xf32> -> vector<16x48xf32>
    %19 = arith.mulf %1, %3 : vector<16x128xf32>
    %cst_16 = arith.constant dense<0.000000e+00> : vector<16x48xf32>
    %20 = tpu.matmul %19, %11, %cst_16 {dimension_numbers = #tpu.dot_dimension_numbers<[1], [0], [0], [1], [0, 0, 1, 1], [], []>} : vector<16x128xf32>, vector<128x48xf32>, vector<16x48xf32> -> vector<16x48xf32>
    %cst_17 = arith.constant dense<0.000000e+00> : vector<8x48xf32>
    %21 = tpu.matmul %12, %13, %cst_17 {dimension_numbers = #tpu.dot_dimension_numbers<[1], [0], [0], [1], [0, 0, 1, 1], [], []>} : vector<8x16xf32>, vector<16x48xf32>, vector<8x48xf32> -> vector<8x48xf32>
    %cst_18 = arith.constant dense<0.000000e+00> : vector<8x48xf32>
    %22 = tpu.matmul %12, %14, %cst_18 {dimension_numbers = #tpu.dot_dimension_numbers<[1], [0], [0], [1], [0, 0, 1, 1], [], []>} : vector<8x16xf32>, vector<16x48xf32>, vector<8x48xf32> -> vector<8x48xf32>
    %cst_19 = arith.constant dense<0.000000e+00> : vector<8x48xf32>
    %23 = tpu.matmul %12, %16, %cst_19 {dimension_numbers = #tpu.dot_dimension_numbers<[1], [0], [0], [1], [0, 0, 1, 1], [], []>} : vector<8x16xf32>, vector<16x48xf32>, vector<8x48xf32> -> vector<8x48xf32>
    %cst_20 = arith.constant dense<0.000000e+00> : vector<8x48xf32>
    %24 = tpu.matmul %12, %18, %cst_20 {dimension_numbers = #tpu.dot_dimension_numbers<[1], [0], [0], [1], [0, 0, 1, 1], [], []>} : vector<8x16xf32>, vector<16x48xf32>, vector<8x48xf32> -> vector<8x48xf32>
    %cst_21 = arith.constant dense<0.000000e+00> : vector<8x48xf32>
    %25 = tpu.matmul %12, %20, %cst_21 {dimension_numbers = #tpu.dot_dimension_numbers<[1], [0], [0], [1], [0, 0, 1, 1], [], []>} : vector<8x16xf32>, vector<16x48xf32>, vector<8x48xf32> -> vector<8x48xf32>
    %26 = arith.mulf %21, %21 : vector<8x48xf32>
    %27 = arith.subf %23, %26 : vector<8x48xf32>
    %28 = arith.mulf %22, %22 : vector<8x48xf32>
    %29 = arith.subf %24, %28 : vector<8x48xf32>
    %30 = arith.mulf %21, %22 : vector<8x48xf32>
    %31 = arith.subf %25, %30 : vector<8x48xf32>
    %cst_22 = arith.constant 2.000000e+00 : f32
    %32 = vector.broadcast %cst_22 : f32 to vector<8x48xf32>
    %33 = arith.mulf %32, %21 : vector<8x48xf32>
    %34 = arith.mulf %33, %22 : vector<8x48xf32>
    %cst_23 = arith.constant 9.99999974E-5 : f32
    %35 = vector.broadcast %cst_23 : f32 to vector<8x48xf32>
    %36 = arith.addf %34, %35 : vector<8x48xf32>
    %cst_24 = arith.constant 2.000000e+00 : f32
    %37 = vector.broadcast %cst_24 : f32 to vector<8x48xf32>
    %38 = arith.mulf %37, %31 : vector<8x48xf32>
    %cst_25 = arith.constant 8.99999984E-4 : f32
    %39 = vector.broadcast %cst_25 : f32 to vector<8x48xf32>
    %40 = arith.addf %38, %39 : vector<8x48xf32>
    %41 = arith.mulf %36, %40 : vector<8x48xf32>
    %42 = arith.mulf %21, %21 : vector<8x48xf32>
    %43 = arith.mulf %22, %22 : vector<8x48xf32>
    %44 = arith.addf %42, %43 : vector<8x48xf32>
    %cst_26 = arith.constant 9.99999974E-5 : f32
    %45 = vector.broadcast %cst_26 : f32 to vector<8x48xf32>
    %46 = arith.addf %44, %45 : vector<8x48xf32>
    %47 = arith.addf %27, %29 : vector<8x48xf32>
    %cst_27 = arith.constant 8.99999984E-4 : f32
    %48 = vector.broadcast %cst_27 : f32 to vector<8x48xf32>
    %49 = arith.addf %47, %48 : vector<8x48xf32>
    %50 = arith.mulf %46, %49 : vector<8x48xf32>
    %51 = arith.divf %41, %50 : vector<8x48xf32>
    %52 = tpu.iota {dimensions = array<i32: 0>} : vector<8x48xi32>
    %c6_i32 = arith.constant 6 : i32
    %53 = vector.broadcast %c6_i32 : i32 to vector<8x48xi32>
    %54 = arith.cmpi slt, %52, %53 : vector<8x48xi32>
    %cst_28 = arith.constant 0.000000e+00 : f32
    %55 = vector.broadcast %cst_28 : f32 to vector<8x48xf32>
    %56 = arith.select %54, %51, %55 : vector<8x48xi1>, vector<8x48xf32>
    %cst_29 = arith.constant dense<0.000000e+00> : vector<8xf32>
    %57 = vector.multi_reduction <add>, %56, %cst_29 [1] : vector<8x48xf32> to vector<8xf32>
    %58 = vector.shape_cast %57 : vector<8xf32> to vector<8x1xf32>
    %cst_30 = arith.constant dense<0.000000e+00> : vector<1xf32>
    %59 = vector.multi_reduction <add>, %58, %cst_30 [0] : vector<8x1xf32> to vector<1xf32>
    %60 = vector.shape_cast %59 : vector<1xf32> to vector<1x1xf32>
    %c0_31 = arith.constant 0 : index
    %c0_32 = arith.constant 0 : index
    %61 = vector.load %arg6[%c0_31, %c0_32] : memref<1x1xf32, #tpu.memory_space<vmem>>, vector<1x1xf32>
    tpu.vector_store %arg6[%c0_31, %c0_32], %60 {strides = array<i32>} : memref<1x1xf32, #tpu.memory_space<vmem>>, vector<1x1xf32>,
    return
  }
  func.func @transform_0(%arg0: i32) -> (i32, i32) {
    %c0_i32 = arith.constant 0 : i32
    %c0_i32_0 = arith.constant 0 : i32
    %c0_i32_1 = arith.constant 0 : i32
    return %c0_i32, %c0_i32_0 : i32, i32
  }
  func.func @transform_1(%arg0: i32) -> (i32, i32) {
    %c0_i32 = arith.constant 0 : i32
    %c0_i32_0 = arith.constant 0 : i32
    %c0_i32_1 = arith.constant 0 : i32
    return %c0_i32, %c0_i32_0 : i32, i32
  }
  func.func @transform_2(%arg0: i32) -> (i32, i32, i32) {
    %c0_i32 = arith.constant 0 : i32
    %c0_i32_0 = arith.constant 0 : i32
    %c0_i32_1 = arith.constant 0 : i32
    return %arg0, %c0_i32, %c0_i32_0 : i32, i32, i32
  }
  func.func @transform_3(%arg0: i32) -> (i32, i32, i32) {
    %c0_i32 = arith.constant 0 : i32
    %c0_i32_0 = arith.constant 0 : i32
    %c0_i32_1 = arith.constant 0 : i32
    return %arg0, %c0_i32, %c0_i32_0 : i32, i32, i32
  }
  func.func @transform_4(%arg0: i32) -> (i32, i32) {
    %c0_i32 = arith.constant 0 : i32
    %c0_i32_0 = arith.constant 0 : i32
    return %arg0, %c0_i32 : i32, i32
  }
  func.func @transform_5(%arg0: i32) -> (i32, i32) {
    %c0_i32 = arith.constant 0 : i32
    %c0_i32_0 = arith.constant 0 : i32
    return %arg0, %c0_i32 : i32, i32
  }
}

</mosaic_0001>

<bundles_post_ra>
// kernel: tpu_custom_call.1
= control target key start
LH: loop header
LB: loop body
LE: loop exit
PB: predicated region body
PF: predicated region fallthrough
CT: control target
= control target key end

     0   :  { %11 = vsyncpa [#allocation3], 0  ;;  %s1664_s0 = inlined_call_operand.vmem [shape: f32[128,48], index: 0, kind: input, shape index: {}]   ;;  %s1665_s1 = inlined_call_operand.vmem [shape: f32[8,16], index: 1, kind: input, shape index: {}]   ;;  %s1666_s2 = inlined_call_operand.vmem [shape: f32[1,16,128], index: 2, kind: input, shape index: {}]   ;;  %s1667_s3 = inlined_call_operand.vmem [shape: f32[1,16,128], index: 3, kind: input, shape index: {}]   ;;  %s1668_s4 = inlined_call_operand.hbm [shape: f32[1,1], index: 4, kind: output, shape index: {0}]   ;;  %s1669_s5 = inlined_call_operand.hbm [shape: f32[1,1], index: 5, kind: output, shape index: {1}]  }
   0x1   :  { %v42_v0 = vld [vmem:[%s1664_s0] sm:$0xff]  ;;  %v43_v1 = vld [vmem:[%s1664_s0 + $0x8] sm:$0xff]  ;;  %v44_v2 = vld [vmem:[%s1664_s0 + $0x10] sm:$0xff] }
   0x2   :  { %v1450_v3 = vpack.c.bf16 %v43_v1, %v42_v0  ;;  %v45_v4 = vld [vmem:[%s1664_s0 + $0x18] sm:$0xff]  ;;  %v46_v6 = vld [vmem:[%s1664_s0 + $0x20] sm:$0xff]  ;;  %v47_v7 = vld [vmem:[%s1664_s0 + $0x28] sm:$0xff] }
   0x3   :  { %v1455_v5 = vpack.c.bf16 %v45_v4, %v44_v2  ;;  %v1468_v8 = vpack.c.bf16 %v47_v7, %v46_v6  ;;  %v48_v9 = vld [vmem:[%s1664_s0 + $0x30] sm:$0xff]  ;;  %v1477_v10 = vld [vmem:[%s1666_s2] sm:$0xff]  ;;  %v49_v11 = vld [vmem:[%s1664_s0 + $0x38] sm:$0xff] }
   0x4   :  { %1177 = vmatprep.subr.bf16.mxu0 %v1450_v3  ;;  %1209 = vmatprep.subr.bf16.mxu1 %v1450_v3  ;;  %v1486_v12 = vld [vmem:[%s1667_s3] sm:$0xff] }
   0x5   :  { %1179 = vmatpush3.bf16.msra.mxu0 %v1450_v3  ;;  %1211 = vmatpush3.bf16.msra.mxu1 %v1450_v3 }
   0x6   :  { %1181 = vmatprep.subr.bf16.mxu0 %v1455_v5  ;;  %1213 = vmatprep.subr.bf16.mxu1 %v1455_v5 }
   0x7   :  { %998 = vmatprep.mubr.f32.mxu0 %v1477_v10 }
   0x8   :  { %12 = vsyncpa [#allocation5], 0  ;;  %1033 = vmatprep.mubr.f32.mxu1 %v1486_v12  ;;  %v1492_v13 = vpack.c.bf16 %v49_v11, %v48_v9  ;;  %v50_v14 = vld [vmem:[%s1664_s0 + $0x40] sm:$0xff]  ;;  %v51_v15 = vld [vmem:[%s1664_s0 + $0x48] sm:$0xff]  ;;  %v209_v28 = vmul.f32 %v1477_v10, %v1477_v10  ;;  %v286_v29 = vmul.f32 %v1486_v12, %v1486_v12  ;;  %v363_v32 = vmul.f32 %v1486_v12, %v1477_v10 }
   0x9   :  { %1183 = vmatpush3.bf16.msra.mxu0 %v1455_v5  ;;  %1215 = vmatpush3.bf16.msra.mxu1 %v1455_v5  ;;  %v1504_v16 = vpack.c.bf16 %v51_v15, %v50_v14  ;;  %v52_v17 = vld [vmem:[%s1664_s0 + $0x50] sm:$0xff]  ;;  %v53_v18 = vld [vmem:[%s1664_s0 + $0x58] sm:$0xff]  ;;  %v54_v20 = vld [vmem:[%s1664_s0 + $0x60] sm:$0xff]  ;;  %v1406_v34 = vmov 0.0|0.0   ;;  %vm1407_vm0 = vmmov 0   ;;  %v1408_v35 = vmov 0.0  }
   0xa   :  { %1185 = vmatprep.subr.bf16.mxu0 %v1468_v8  ;;  %1217 = vmatprep.subr.bf16.mxu1 %v1468_v8  ;;  %v1516_v19 = vpack.c.bf16 %v53_v18, %v52_v17  ;;  %v55_v21 = vld [vmem:[%s1664_s0 + $0x68] sm:$0xff]  ;;  %v56_v23 = vld [vmem:[%s1664_s0 + $0x70] sm:$0xff]  ;;  %v57_v24 = vld [vmem:[%s1664_s0 + $0x78] sm:$0xff]  ;;  %vm440_vm1 = vcmask 130048   ;;  %v25_v52 = vsub.f32 %v1477_v10, %v1486_v12  ;;  %vm817_vm3 = vcmask 392192  }
   0xb   :  { %v1528_v22 = vpack.c.bf16 %v55_v21, %v54_v20  ;;  %v1540_v25 = vpack.c.bf16 %v57_v24, %v56_v23  ;;  %v1551_v26 = vld [vmem:[%s1666_s2 + $0x8] sm:$0xff]  ;;  %v58_v42 = vld [vmem:[%s1665_s1] sm:$0xff]  ;;  %vm40_vm4 = vcmask 0   ;;  %s1409_s1 = smov [#allocation2]  }
   0xc   :  { %v1557_v27 = vld [vmem:[%s1667_s3 + $0x8] sm:$0xff]  ;;  %v210_v30 = vmul.f32 %v1551_v26, %v1551_v26  ;;  %v27_v53 = vmul.f32 %v25_v52, %v25_v52  ;;  %s834_s7 = sshll.u32 %s1409_s1, 4  ;;  %s835_s7 = int_to_ptr.vmem [resolvable:$true] %s834_s7 }
   0xd   :  { %1187 = vmatpush3.bf16.msra.mxu0 %v1468_v8  ;;  %1219 = vmatpush3.bf16.msra.mxu1 %v1468_v8  ;;  %v287_v31 = vmul.f32 %v1557_v27, %v1557_v27  ;;  %v364_v33 = vmul.f32 %v1557_v27, %v1551_v26  ;;  %v26_v54 = vsub.f32 %v1551_v26, %v1557_v27  ;;  %s1358_s8 = scalar_lea.vmem %s835_s7, 16  ;;  %s1362_s9 = scalar_lea.vmem %s835_s7, 32 }
   0xe   :  { %1189 = vmatprep.subr.bf16.mxu0 %v1492_v13  ;;  %1221 = vmatprep.subr.bf16.mxu1 %v1492_v13  ;;  %p1359_p0 = scmp.ne.s32.totalorder %s835_s7, %s1358_s8  ;;  %p1363_p1 = scmp.lt.s32.totalorder %s835_s7, %s835_s7 }
   0xf   :  { %29 = vadd.xlane.f32.xlu0 %v27_v53  ;;  %v28_v55 = vmul.f32 %v26_v54, %v26_v54  ;;  %p1364_p2 = scmp.lt.s32.totalorder %s1362_s9, %s1358_s8 }
  0x11   :  { %1191 = vmatpush3.bf16.msra.mxu0 %v1492_v13  ;;  %1223 = vmatpush3.bf16.msra.mxu1 %v1492_v13  ;;  %p1365_p3 = por %p1364_p2, %p1363_p1 }
  0x12   :  { %1193 = vmatprep.subr.bf16.mxu0 %v1504_v16  ;;  %1225 = vmatprep.subr.bf16.mxu1 %v1504_v16 }
  0x13   :  { %31 = vadd.xlane.f32.xlu0 %v28_v55  ;;  %p1366_p4 = pnand %p1365_p3, %p1359_p0 }
  0x15   :  { %1195 = vmatpush3.bf16.msra.mxu0 %v1504_v16  ;;  %1227 = vmatpush3.bf16.msra.mxu1 %v1504_v16 }
  0x16   :  { %1197 = vmatprep.subr.bf16.mxu0 %v1516_v19  ;;  %1229 = vmatprep.subr.bf16.mxu1 %v1516_v19 }
  0x19   :  { %1199 = vmatpush3.bf16.msra.mxu0 %v1516_v19  ;;  %1231 = vmatpush3.bf16.msra.mxu1 %v1516_v19 }
  0x1a   :  { %1201 = vmatprep.subr.bf16.mxu0 %v1528_v22  ;;  %1233 = vmatprep.subr.bf16.mxu1 %v1528_v22 }
  0x1d   :  { %1203 = vmatpush3.bf16.msra.mxu0 %v1528_v22  ;;  %1235 = vmatpush3.bf16.msra.mxu1 %v1528_v22 }
  0x1e   :  { %1205 = vmatprep.subr.bf16.mxu0 %v1540_v25  ;;  %1237 = vmatprep.subr.bf16.mxu1 %v1540_v25 }
  0x21   :  { %1207 = vmatpush3.bf16.msra.mxu0 %v1540_v25  ;;  %1239 = vmatpush3.bf16.msra.mxu1 %v1540_v25 }
  0x22   :  { %1241 = vmatprep.subr.bf16.mxu0 %v1450_v3  ;;  %1273 = vmatprep.subr.bf16.mxu1 %v1450_v3 }
  0x24   :  { %999 = vmatmul.mubr.f32.vlgmr.msra.gmra.mrb[0].mxu0 %v1551_v26  ;;  %1034 = vmatmul.mubr.f32.vlgmr.msra.gmra.mrb[0].mxu1 %v1557_v27 }
  0x25   :  { %1243 = vmatpush3.bf16.msra.mxu0 %v1450_v3  ;;  %1275 = vmatpush3.bf16.msra.mxu1 %v1450_v3 }
  0x26   :  { %1245 = vmatprep.subr.bf16.mxu0 %v1455_v5  ;;  %1277 = vmatprep.subr.bf16.mxu1 %v1455_v5 }
  0x27   :  { %1068 = vmatprep.mubr.f32.mxu0 %v209_v28  ;;  %1103 = vmatprep.mubr.f32.mxu1 %v286_v29 }
  0x29   :  { %1247 = vmatpush3.bf16.msra.mxu0 %v1455_v5  ;;  %1279 = vmatpush3.bf16.msra.mxu1 %v1455_v5 }
  0x2a   :  { %1249 = vmatprep.subr.bf16.mxu0 %v1468_v8  ;;  %1281 = vmatprep.subr.bf16.mxu1 %v1468_v8 }
  0x2d   :  { %1251 = vmatpush3.bf16.msra.mxu0 %v1468_v8  ;;  %1283 = vmatpush3.bf16.msra.mxu1 %v1468_v8 }
  0x2e   :  { %1253 = vmatprep.subr.bf16.mxu0 %v1492_v13  ;;  %1285 = vmatprep.subr.bf16.mxu1 %v1492_v13 }
  0x31   :  { %1255 = vmatpush3.bf16.msra.mxu0 %v1492_v13  ;;  %1287 = vmatpush3.bf16.msra.mxu1 %v1492_v13 }
  0x32   :  { %1257 = vmatprep.subr.bf16.mxu0 %v1504_v16  ;;  %1289 = vmatprep.subr.bf16.mxu1 %v1504_v16 }
  0x35   :  { %1259 = vmatpush3.bf16.msra.mxu0 %v1504_v16  ;;  %1291 = vmatpush3.bf16.msra.mxu1 %v1504_v16 }
  0x36   :  { %1261 = vmatprep.subr.bf16.mxu0 %v1516_v19  ;;  %1293 = vmatprep.subr.bf16.mxu1 %v1516_v19 }
  0x39   :  { %1263 = vmatpush3.bf16.msra.mxu0 %v1516_v19  ;;  %1295 = vmatpush3.bf16.msra.mxu1 %v1516_v19 }
  0x3a   :  { %1265 = vmatprep.subr.bf16.mxu0 %v1528_v22  ;;  %1297 = vmatprep.subr.bf16.mxu1 %v1528_v22 }
  0x3d   :  { %1267 = vmatpush3.bf16.msra.mxu0 %v1528_v22  ;;  %1299 = vmatpush3.bf16.msra.mxu1 %v1528_v22 }
  0x3e   :  { %1269 = vmatprep.subr.bf16.mxu0 %v1540_v25  ;;  %1301 = vmatprep.subr.bf16.mxu1 %v1540_v25 }
  0x41   :  { %1271 = vmatpush3.bf16.msra.mxu0 %v1540_v25  ;;  %1303 = vmatpush3.bf16.msra.mxu1 %v1540_v25 }
  0x42   :  { %1305 = vmatprep.subr.bf16.mxu0 %v1450_v3  ;;  %1336 = vmatprep.subr.bf16.mxu1 %v1406_v34 }
  0x44   :  { %1069 = vmatmul.mubr.f32.vlgmr.msra.gmra.mrb[2].mxu0 %v210_v30  ;;  %1104 = vmatmul.mubr.f32.vlgmr.msra.gmra.mrb[2].mxu1 %v287_v31 }
  0x45   :  { %1307 = vmatpush3.bf16.msra.mxu0 %v1450_v3  ;;  %1138 = vmatprep.mubr.f32.mxu0 %v363_v32 }
  0x46   :  { %1309 = vmatprep.subr.bf16.mxu0 %v1455_v5  ;;  %1145 = vmatprep.mubr.msk.f32.mxu1 %vm1407_vm0, %v1408_v35 }
  0x49   :  { %1311 = vmatpush3.bf16.msra.mxu0 %v1455_v5 }
  0x4a   :  { %1313 = vmatprep.subr.bf16.mxu0 %v1468_v8 }
  0x4d   :  { %1315 = vmatpush3.bf16.msra.mxu0 %v1468_v8 }
  0x4e   :  { %1317 = vmatprep.subr.bf16.mxu0 %v1492_v13 }
  0x51   :  { %1319 = vmatpush3.bf16.msra.mxu0 %v1492_v13  ;;  %v813_v13 = vlaneseq }
  0x52   :  { %1321 = vmatprep.subr.bf16.mxu0 %v1504_v16 }
  0x53   :  { %v814_v17 = vshrl.u32 %v813_v13, 7 }
  0x55   :  { %1323 = vmatpush3.bf16.msra.mxu0 %v1504_v16  ;;  %vm815_vm2 = vcmp.lt.s32.totalorder %v814_v17, 6 }
  0x56   :  { %1325 = vmatprep.subr.bf16.mxu0 %v1516_v19 }
  0x59   :  { %1327 = vmatpush3.bf16.msra.mxu0 %v1516_v19 }
  0x5a   :  { %1329 = vmatprep.subr.bf16.mxu0 %v1528_v22 }
  0x5d   :  { %1331 = vmatpush3.bf16.msra.mxu0 %v1528_v22 }
  0x5e   :  { %1333 = vmatprep.subr.bf16.mxu0 %v1540_v25 }
  0x61   :  { %1335 = vmatpush3.bf16.msra.mxu0 %v1540_v25 }
  0x64   :  { %1139 = vmatmul.mubr.f32.vlgmr.msra.gmra.mrb[4].mxu0 %v364_v33 }
  0x9c   :  { %v30_v22 = vpop.xlane.xlu0 %29 }
  0xa0   :  { %v32_v26 = vpop.xlane.xlu0 %31 }
  0xa1   :  { %v33_v27 = vadd.f32 %v32_v26, %v30_v22 }
  0xa3   :  { %v34_v28 = vrot.slane %v33_v27, 4 }
  0xa5   :  { %v35_v29 = vadd.f32 %v34_v28, %v33_v27 }
  0xa7   :  { %v36_v30 = vrot.slane %v35_v29, 2 }
  0xa9   :  { %v37_v31 = vadd.f32 %v36_v30, %v35_v29 }
  0xab   :  { %v38_v32 = vrot.slane %v37_v31, 1 }
  0xad   :  { %v39_v33 = vadd.f32 %v38_v32, %v37_v31 }
  0xaf   :  { %41 = vst.msk [vmem:[#allocation2] sm:$0x1] %vm40_vm4, %v39_v33 }
  0xf7   :  { %v1000_v36 = vpop.f32.mrb[0].mxu0  ;;  %v1035_v37 = vpop.f32.mrb[0].mxu1 }
  0xf8   :  { %v125_v38 = vpop.f32.mrb[1].mxu0  ;;  %v200_v39 = vpop.f32.mrb[1].mxu1 }
  0xf9   :  { %v1337_v40 = vpack.c.bf16 %v1000_v36, %v125_v38  ;;  %v1340_v41 = vpack.c.bf16 %v1035_v37, %v200_v39 }
  0xfb   :  { %1338 = vmatpush3.bf16.msra.mxu1 %v1337_v40 }
  0xfc   :  { %1339 = vmatprep.subr.bf16.mxu1 %v1406_v34 }
  0xfe   :  { %1146 = vmatmul.mubr.msk.f32.vlgmr.msra.gmra.mrb[4].mxu1 %vm440_vm1, %v58_v42 }
  0xff   :  { %1341 = vmatpush3.bf16.msra.mxu1 %v1340_v41  ;;  %1152 = vmatprep.mubr.msk.f32.mxu1 %vm1407_vm0, %v1408_v35 }
 0x100   :  { %1342 = vmatprep.subr.bf16.mxu1 %v1406_v34 }
 0x102   :  { %1153 = vmatmul.mubr.msk.f32.vlgmr.msra.gmra.mrb[6].mxu1 %vm440_vm1, %v58_v42 }
 0x103   :  { %1159 = vmatprep.mubr.msk.f32.mxu1 %vm1407_vm0, %v1408_v35 }
 0x117   :  { %v1070_v43 = vpop.f32.mrb[2].mxu0  ;;  %v1105_v44 = vpop.f32.mrb[2].mxu1 }
 0x118   :  { %v277_v45 = vpop.f32.mrb[3].mxu0  ;;  %v354_v46 = vpop.f32.mrb[3].mxu1 }
 0x119   :  { %v1343_v47 = vpack.c.bf16 %v1070_v43, %v277_v45  ;;  %v1346_v48 = vpack.c.bf16 %v1105_v44, %v354_v46 }
 0x11b   :  { %1344 = vmatpush3.bf16.msra.mxu1 %v1343_v47 }
 0x11c   :  { %1345 = vmatprep.subr.bf16.mxu1 %v1406_v34 }
 0x11e   :  { %1160 = vmatmul.mubr.msk.f32.vlgmr.msra.gmra.mrb[8].mxu1 %vm440_vm1, %v58_v42 }
 0x11f   :  { %1347 = vmatpush3.bf16.msra.mxu1 %v1346_v48  ;;  %1166 = vmatprep.mubr.msk.f32.mxu1 %vm1407_vm0, %v1408_v35 }
 0x120   :  { %1348 = vmatprep.subr.bf16.mxu1 %v1406_v34 }
 0x122   :  { %1167 = vmatmul.mubr.msk.f32.vlgmr.msra.gmra.mrb[10].mxu1 %vm440_vm1, %v58_v42 }
 0x123   :  { %1173 = vmatprep.mubr.msk.f32.mxu1 %vm1407_vm0, %v1408_v35 }
 0x137   :  { %v1140_v49 = vpop.f32.mrb[4].mxu0 }
 0x138   :  { %v431_v50 = vpop.f32.mrb[5].mxu0 }
 0x139   :  { %v1349_v51 = vpack.c.bf16 %v1140_v49, %v431_v50 }
 0x13b   :  { %1350 = vmatpush3.bf16.msra.mxu1 %v1349_v51 }
 0x13e   :  { %1174 = vmatmul.mubr.msk.f32.vlgmr.msra.gmra.mrb[12].mxu1 %vm440_vm1, %v58_v42 }
 0x1d1   :  { %v510_v56 = vpop.f32.mrb[4].mxu1 }
 0x1d2   :  { %v800_v57 = vmul.f32 2.0, %v510_v56  ;;  %v1147_v58 = vpop.f32.mrb[5].mxu1  ;;  %v794_v62 = vmul.f32 %v510_v56, %v510_v56 }
 0x1d5   :  { %v580_v59 = vpop.f32.mrb[6].mxu1 }
 0x1d6   :  { %v801_v60 = vmul.f32 %v800_v57, %v580_v59  ;;  %v1154_v61 = vpop.f32.mrb[7].mxu1  ;;  %v796_v63 = vmul.f32 %v580_v59, %v580_v59  ;;  %v798_v0 = vmul.f32 %v580_v59, %v510_v56 }
 0x1d8   :  { %v806_v1 = vadd.f32 %v796_v63, %v794_v62  ;;  %v802_v18 = vadd.f32 0.0001, %v801_v60 }
 0x1da   :  { %v807_v8 = vadd.f32 0.0001, %v806_v1 }
 0x1f1   :  { %v650_v2 = vpop.f32.mrb[8].mxu1 }
 0x1f2   :  { %v795_v3 = vsub.f32 %v650_v2, %v794_v62  ;;  %v1161_v4 = vpop.f32.mrb[9].mxu1 }
 0x1f5   :  { %v720_v5 = vpop.f32.mrb[10].mxu1 }
 0x1f6   :  { %v797_v6 = vsub.f32 %v720_v5, %v796_v63  ;;  %v1168_v7 = vpop.f32.mrb[11].mxu1 }
 0x1f8   :  { %v808_v9 = vadd.f32 %v797_v6, %v795_v3 }
 0x1fa   :  { %v809_v10 = vadd.f32 0.0009, %v808_v9 }
 0x1fc   :  { %v810_v11 = vmul.f32 %v809_v10, %v807_v8 }
 0x1fe   :  { %1356 = vrcp.f32 %v810_v11 }
 0x208   :  { %v1357_v21 = vpop.eup %1356 }
 0x211   :  { %v790_v12 = vpop.f32.mrb[12].mxu1 }
 0x212   :  { %v799_v14 = vsub.f32 %v790_v12, %v798_v0  ;;  %v1175_v15 = vpop.f32.mrb[13].mxu1 }
 0x214   :  { %v803_v16 = vmul.f32 2.0, %v799_v14 }
 0x216   :  { %v804_v19 = vadd.f32 0.0009, %v803_v16 }
 0x218   :  { %v805_v20 = vmul.f32 %v804_v19, %v802_v18 }
 0x21a   :  { %v812_v23 = vmul.f32 %v1357_v21, %v805_v20 }
 0x21c   :  { %v816_v24 = vsel %vm815_vm2, %v812_v23, 0.0 }
 0x21d   :  { %v818_v25 = vsel %vm817_vm3, %v816_v24, 0.0 }
 0x21e   :  { %819 = vadd.xlane.f32.xlu1 %v818_v25 }
 0x21f   :  { %1369 = shalt.err (!%p1366_p4)
}
 0x220   :  { %s1370_s12 = scalar_lea.hbm %s1668_s4, 16 }
 0x221   :  { %p1371_p5 = scmp.ne.s32.totalorder %s1668_s4, %s1370_s12  ;;  %p1374_p6 = scmp.lt.u32.totalorder %s1370_s12, %s1668_s4 }
 0x223   :  { %p1376_p7 = pnand %p1374_p6, %p1371_p5 }
 0x225   :  { %1379 = shalt.err (!%p1376_p7)
}
 0x226   :  { %837 = dma.vmem_to_hbm [thread:$0]  %s835_s7, 16, %s1668_s4, [#allocation3]  }
 0x227   :  { %s1410_s19 = smov [#allocation4]  }
 0x228   :  { %s844_s20 = sshll.u32 %s1410_s19, 4  ;;  %s845_s20 = int_to_ptr.vmem [resolvable:$true] %s844_s20 }
 0x229   :  { %s1380_s21 = scalar_lea.vmem %s845_s20, 16  ;;  %s1384_s22 = scalar_lea.vmem %s845_s20, 32 }
 0x22a   :  { %p1381_p8 = scmp.ne.s32.totalorder %s845_s20, %s1380_s21  ;;  %p1385_p9 = scmp.lt.s32.totalorder %s845_s20, %s845_s20 }
 0x22b   :  { %p1386_p10 = scmp.lt.s32.totalorder %s1384_s22, %s1380_s21 }
 0x22d   :  { %p1387_p11 = por %p1386_p10, %p1385_p9 }
 0x22f   :  { %p1388_p12 = pnand %p1387_p11, %p1381_p8 }
 0x2ab   :  { %v820_v34 = vpop.xlane.xlu1 %819 }
 0x2ac   :  { %v821_v35 = vrot.slane %v820_v34, 4 }
 0x2ae   :  { %v822_v36 = vadd.f32 %v821_v35, %v820_v34 }
 0x2b0   :  { %v823_v37 = vrot.slane %v822_v36, 2 }
 0x2b2   :  { %v824_v38 = vadd.f32 %v823_v37, %v822_v36 }
 0x2b4   :  { %v825_v39 = vrot.slane %v824_v38, 1 }
 0x2b6   :  { %v826_v40 = vadd.f32 %v825_v39, %v824_v38 }
 0x2b8   :  { %827 = vst.msk [vmem:[#allocation4] sm:$0x1] %vm40_vm4, %v826_v40 }
 0x2b9   :  { %1391 = shalt.err (!%p1388_p12)
}
 0x2ba   :  { %s1392_s24 = scalar_lea.hbm %s1669_s5, 16 }
 0x2bb   :  { %p1393_p13 = scmp.ne.s32.totalorder %s1669_s5, %s1392_s24  ;;  %p1396_p0 = scmp.lt.u32.totalorder %s1392_s24, %s1669_s5 }
 0x2bd   :  { %p1398_p1 = pnand %p1396_p0, %p1393_p13 }
 0x2bf   :  { %1401 = shalt.err (!%p1398_p1)
}
 0x2c0   :  { %847 = dma.vmem_to_hbm [thread:$0]  %s845_s20, 16, %s1669_s5, [#allocation5]  }
 0x2c1   :  { %1402 = dma.done.wait [#allocation3], 16  }
 0x2c2   :  { %1403 = vsyncadd [#allocation3], 4294967280 }
 0x2c3   :  { %1404 = dma.done.wait [#allocation5], 16  }
 0x2c4   :  { %1405 = vsyncadd [#allocation5], 4294967280 }
 0x2c5   :  { %854 = vsyncpa [#allocation3], 1 }
 0x2c6   :  { %855 = vsyncpa [#allocation5], 1 }

</bundles_post_ra>
